<compile_context>
chip_gen: v7x
topology: tpu7x:2x2x1
jax: 0.10.0
libtpu: 0.0.40
codegen_flags: <defaults>
</compile_context>

<pallas_src>
import jax
import jax.numpy as jnp
from jax.experimental import pallas as pl
from jax.experimental.pallas import tpu as pltpu

FEATURE_DIM = 10 + 1 + 1            # 12
TIME_DIM = 50                       # len(np.linspace(0.1, 5, 50))
INPUT_DIM = TIME_DIM * FEATURE_DIM  # 600
HIDDEN = 50

# Lane-dense padded sizes (zero-filled pads; results unchanged, see below).
IN_PAD = 640                        # 5 * 128
HID_PAD = 128
OUT_PAD = 128

_LANE = 128
_SUBLANE = 8
_DEFAULT_TILE_B = 512               # 512*640*2B = 640 KiB / input buffer -> VMEM-safe on v7x


def _round_up(n, m):
    return (n + m - 1) // m * m


def mepnet_kernel(x_ref, w1_ref, b1_ref, w2_ref, b2_ref, w3_ref, out_ref):
    # x tile: (TILE_B, IN_PAD) bf16; weights bf16; biases f32.
    x = x_ref[...]

    # fc1 + tanh  (bf16 MXU matmul, f32 accumulate + elementwise)
    h1 = jnp.dot(x, w1_ref[...], preferred_element_type=jnp.float32)
    h1 = jnp.tanh(h1 + b1_ref[...])                               # (TILE_B, HID_PAD) f32

    # fc2 (linear, no activation)
    h2 = jnp.dot(h1.astype(jnp.bfloat16), w2_ref[...],
                 preferred_element_type=jnp.float32)
    h2 = h2 + b2_ref[...]                                         # (TILE_B, HID_PAD) f32

    # fc3 (no bias) + softplus (stable: logaddexp(z, 0))
    z = jnp.dot(h2.astype(jnp.bfloat16), w3_ref[...],
                preferred_element_type=jnp.float32)
    out_ref[...] = jnp.logaddexp(z, 0.0).astype(out_ref.dtype)    # (TILE_B, OUT_PAD)


def mepnet_forward(x, w1, b1, w2, b2, w3, *, tile_b=None):
    """x: (B, TIME_DIM, FEATURE_DIM) or (B, INPUT_DIM). Returns (B, TIME_DIM) f32."""
    B = x.shape[0]
    x2d = x.reshape(B, -1).astype(jnp.float32)
    assert x2d.shape[1] == INPUT_DIM

    if tile_b is None:
        tile_b = min(_DEFAULT_TILE_B, _round_up(B, _SUBLANE))
    tile_b = _round_up(tile_b, _SUBLANE)
    b_pad = _round_up(max(B, tile_b), tile_b)
    num_tiles = b_pad // tile_b

    # Zero-padded, lane-dense operands.  Pads are zero on BOTH the activation and
    # weight sides (and on the biases), so padded hidden units carry exactly 0
    # into the next layer; padded output columns / batch rows are sliced off.
    xp = jnp.zeros((b_pad, IN_PAD), jnp.float32).at[:B, :INPUT_DIM].set(x2d)
    xp = xp.astype(jnp.bfloat16)
    w1p = (jnp.zeros((IN_PAD, HID_PAD), jnp.float32)
           .at[:INPUT_DIM, :HIDDEN].set(w1).astype(jnp.bfloat16))
    w2p = (jnp.zeros((HID_PAD, HID_PAD), jnp.float32)
           .at[:HIDDEN, :HIDDEN].set(w2).astype(jnp.bfloat16))
    w3p = (jnp.zeros((HID_PAD, OUT_PAD), jnp.float32)
           .at[:HIDDEN, :TIME_DIM].set(w3).astype(jnp.bfloat16))
    b1p = jnp.zeros((1, HID_PAD), jnp.float32).at[:, :HIDDEN].set(b1.reshape(1, HIDDEN))
    b2p = jnp.zeros((1, HID_PAD), jnp.float32).at[:, :HIDDEN].set(b2.reshape(1, HIDDEN))

    flops = 2 * b_pad * (IN_PAD * HID_PAD + HID_PAD * HID_PAD + HID_PAD * OUT_PAD)
    transcendentals = b_pad * (HID_PAD + 2 * OUT_PAD)             # tanh + exp/log of softplus
    bytes_accessed = (xp.size * 2 + b_pad * OUT_PAD * 4
                      + (w1p.size + w2p.size + w3p.size) * 2
                      + (b1p.size + b2p.size) * 4)

    # NOTE: pipeline_mode=pl.Buffered(3) on the x spec is an optional extra lever
    # once the batch grid exists; left at the default double-buffering here.
    out = pl.pallas_call(
        mepnet_kernel,
        out_shape=jax.ShapeDtypeStruct((b_pad, OUT_PAD), jnp.float32),
        grid=(num_tiles,),
        in_specs=[
            pl.BlockSpec((tile_b, IN_PAD), lambda i: (i, 0)),     # x: tiled over batch
            pl.BlockSpec((IN_PAD, HID_PAD), lambda i: (0, 0)),    # w1: VMEM-resident
            pl.BlockSpec((1, HID_PAD), lambda i: (0, 0)),         # b1
            pl.BlockSpec((HID_PAD, HID_PAD), lambda i: (0, 0)),   # w2
            pl.BlockSpec((1, HID_PAD), lambda i: (0, 0)),         # b2
            pl.BlockSpec((HID_PAD, OUT_PAD), lambda i: (0, 0)),   # w3
        ],
        out_specs=pl.BlockSpec((tile_b, OUT_PAD), lambda i: (i, 0)),
        compiler_params=pltpu.CompilerParams(
            dimension_semantics=("parallel",),
            vmem_limit_bytes=32 << 20,
        ),
        cost_estimate=pl.CostEstimate(
            flops=flops,
            transcendentals=transcendentals,
            bytes_accessed=bytes_accessed,
        ),
    )(xp, w1p, b1p, w2p, b2p, w3p)

    return out[:B, :TIME_DIM]


def init_params(key):
    """Deterministic init (uniform in +/- 1/sqrt(fan_in), like torch defaults)."""
    k1, k2, k3, k4, k5 = jax.random.split(key, 5)
    s1 = 1.0 / jnp.sqrt(INPUT_DIM)
    s2 = 1.0 / jnp.sqrt(HIDDEN)
    # stored as (in, out) => equals torch weight.T
    w1 = jax.random.uniform(k1, (INPUT_DIM, HIDDEN), jnp.float32, -s1, s1)
    b1 = jax.random.uniform(k2, (HIDDEN,), jnp.float32, -s1, s1)
    w2 = jax.random.uniform(k3, (HIDDEN, HIDDEN), jnp.float32, -s2, s2)
    b2 = jax.random.uniform(k4, (HIDDEN,), jnp.float32, -s2, s2)
    w3 = jax.random.uniform(k5, (HIDDEN, TIME_DIM), jnp.float32, -s2, s2)
    return w1, b1, w2, b2, w3


def reference_forward(x, w1, b1, w2, b2, w3):
    x2d = x.reshape(x.shape[0], -1).astype(jnp.float32)
    h = jnp.tanh(x2d @ w1 + b1)
    h = h @ w2 + b2
    return jax.nn.softplus(h @ w3)


if __name__ == "__main__":
    key = jax.random.PRNGKey(0)
    kx, kx2, kp = jax.random.split(key, 3)
    params = init_params(kp)

    # Small-batch check (single tile).
    B = 2
    x = jax.random.normal(kx, (B, TIME_DIM, FEATURE_DIM), dtype=jnp.float32)
    out = jax.block_until_ready(mepnet_forward(x, *params))
    ref = reference_forward(x, *params)
    assert out.shape == (B, TIME_DIM)
    # bf16 matmul operands (f32 accumulate) => slightly looser tolerance than pure f32.
    assert jnp.allclose(out, ref, atol=2e-2, rtol=2e-2), "mismatch vs reference (B=2)"

    # Multi-tile check (non-divisible batch exercises padding + grid pipeline).
    B2 = 260
    x2 = jax.random.normal(kx2, (B2, TIME_DIM, FEATURE_DIM), dtype=jnp.float32)
    out2 = jax.block_until_ready(mepnet_forward(x2, *params, tile_b=128))
    ref2 = reference_forward(x2, *params)
    assert out2.shape == (B2, TIME_DIM)
    assert jnp.allclose(out2, ref2, atol=2e-2, rtol=2e-2), "mismatch vs reference (B=260)"

    print("KERNEL_OK")
</pallas_src>

<mosaic_0001>
module attributes {stable_mosaic.version = 11 : i64} {
  func.func @mepnet_kernel(%arg0: i32, %arg1: memref<8x640xbf16, #tpu.memory_space<vmem>>, %arg2: memref<640x128xbf16, #tpu.memory_space<vmem>>, %arg3: memref<1x128xf32, #tpu.memory_space<vmem>>, %arg4: memref<128x128xbf16, #tpu.memory_space<vmem>>, %arg5: memref<1x128xf32, #tpu.memory_space<vmem>>, %arg6: memref<128x128xbf16, #tpu.memory_space<vmem>>, %arg7: memref<8x128xf32, #tpu.memory_space<vmem>>) attributes {dimension_semantics = [#tpu.dimension_semantics<parallel>], iteration_bounds = array<i64: 1>, scalar_prefetch = 0 : i64, scratch_operands = 0 : i64, tpu.core_type = #tpu.core_type<tc>, window_params = [{transform_indices = @transform_0, window_bounds = array<i64: 8, 640>}, {pipeline_mode = #tpu.pipeline_mode<synchronous>, transform_indices = @transform_1, window_bounds = array<i64: 640, 128>}, {pipeline_mode = #tpu.pipeline_mode<synchronous>, transform_indices = @transform_2, window_bounds = array<i64: 1, 128>}, {pipeline_mode = #tpu.pipeline_mode<synchronous>, transform_indices = @transform_3, window_bounds = array<i64: 128, 128>}, {pipeline_mode = #tpu.pipeline_mode<synchronous>, transform_indices = @transform_4, window_bounds = array<i64: 1, 128>}, {pipeline_mode = #tpu.pipeline_mode<synchronous>, transform_indices = @transform_5, window_bounds = array<i64: 128, 128>}, {transform_indices = @transform_6, window_bounds = array<i64: 8, 128>}]} {
    %c0 = arith.constant 0 : index
    %c0_0 = arith.constant 0 : index
    %0 = vector.load %arg1[%c0, %c0_0] : memref<8x640xbf16, #tpu.memory_space<vmem>>, vector<8x640xbf16>
    %c0_1 = arith.constant 0 : index
    %c0_2 = arith.constant 0 : index
    %1 = vector.load %arg2[%c0_1, %c0_2] : memref<640x128xbf16, #tpu.memory_space<vmem>>, vector<640x128xbf16>
    %cst = arith.constant dense<0.000000e+00> : vector<8x128xf32>
    %2 = tpu.matmul %0, %1, %cst {dimension_numbers = #tpu.dot_dimension_numbers<[1], [0], [0], [1], [0, 0, 1, 1], [], []>} : vector<8x640xbf16>, vector<640x128xbf16>, vector<8x128xf32> -> vector<8x128xf32>
    %c0_3 = arith.constant 0 : index
    %c0_4 = arith.constant 0 : index
    %3 = vector.load %arg3[%c0_3, %c0_4] : memref<1x128xf32, #tpu.memory_space<vmem>>, vector<1x128xf32>
    %4 = vector.broadcast %3 : vector<1x128xf32> to vector<8x128xf32>
    %5 = arith.addf %2, %4 : vector<8x128xf32>
    %6 = math.tanh %5 : vector<8x128xf32>
    %7 = arith.truncf %6 : vector<8x128xf32> to vector<8x128xbf16>
    %c0_5 = arith.constant 0 : index
    %c0_6 = arith.constant 0 : index
    %8 = vector.load %arg4[%c0_5, %c0_6] : memref<128x128xbf16, #tpu.memory_space<vmem>>, vector<128x128xbf16>
    %cst_7 = arith.constant dense<0.000000e+00> : vector<8x128xf32>
    %9 = tpu.matmul %7, %8, %cst_7 {dimension_numbers = #tpu.dot_dimension_numbers<[1], [0], [0], [1], [0, 0, 1, 1], [], []>} : vector<8x128xbf16>, vector<128x128xbf16>, vector<8x128xf32> -> vector<8x128xf32>
    %c0_8 = arith.constant 0 : index
    %c0_9 = arith.constant 0 : index
    %10 = vector.load %arg5[%c0_8, %c0_9] : memref<1x128xf32, #tpu.memory_space<vmem>>, vector<1x128xf32>
    %11 = vector.broadcast %10 : vector<1x128xf32> to vector<8x128xf32>
    %12 = arith.addf %9, %11 : vector<8x128xf32>
    %13 = arith.truncf %12 : vector<8x128xf32> to vector<8x128xbf16>
    %c0_10 = arith.constant 0 : index
    %c0_11 = arith.constant 0 : index
    %14 = vector.load %arg6[%c0_10, %c0_11] : memref<128x128xbf16, #tpu.memory_space<vmem>>, vector<128x128xbf16>
    %cst_12 = arith.constant dense<0.000000e+00> : vector<8x128xf32>
    %15 = tpu.matmul %13, %14, %cst_12 {dimension_numbers = #tpu.dot_dimension_numbers<[1], [0], [0], [1], [0, 0, 1, 1], [], []>} : vector<8x128xbf16>, vector<128x128xbf16>, vector<8x128xf32> -> vector<8x128xf32>
    %cst_13 = arith.constant 0.000000e+00 : f32
    %16 = vector.broadcast %cst_13 : f32 to vector<8x128xf32>
    %17 = arith.maximumf %15, %16 : vector<8x128xf32>
    %18 = vector.broadcast %cst_13 : f32 to vector<8x128xf32>
    %19 = arith.subf %15, %18 : vector<8x128xf32>
    %20 = arith.cmpf one, %19, %19 : vector<8x128xf32>
    %21 = vector.broadcast %cst_13 : f32 to vector<8x128xf32>
    %22 = arith.addf %15, %21 : vector<8x128xf32>
    %23 = math.absf %19 : vector<8x128xf32>
    %cst_14 = arith.constant 0.000000e+00 : f32
    %24 = vector.broadcast %cst_14 : f32 to vector<8x128xf32>
    %25 = arith.subf %24, %23 : vector<8x128xf32>
    %26 = math.exp %25 : vector<8x128xf32>
    %27 = math.log1p %26 : vector<8x128xf32>
    %28 = arith.addf %17, %27 : vector<8x128xf32>
    %29 = arith.select %20, %22, %28 : vector<8x128xi1>, vector<8x128xf32>
    %c0_15 = arith.constant 0 : index
    %c0_16 = arith.constant 0 : index
    %30 = vector.load %arg7[%c0_15, %c0_16] : memref<8x128xf32, #tpu.memory_space<vmem>>, vector<8x128xf32>
    tpu.vector_store %arg7[%c0_15, %c0_16], %29 {strides = array<i32>} : memref<8x128xf32, #tpu.memory_space<vmem>>, vector<8x128xf32>,
    return
  }
  func.func @transform_0(%arg0: i32) -> (i32, i32) {
    %c0_i32 = arith.constant 0 : i32
    %c0_i32_0 = arith.constant 0 : i32
    return %arg0, %c0_i32 : i32, i32
  }
  func.func @transform_1(%arg0: i32) -> (i32, i32) {
    %c0_i32 = arith.constant 0 : i32
    %c0_i32_0 = arith.constant 0 : i32
    %c0_i32_1 = arith.constant 0 : i32
    return %c0_i32, %c0_i32_0 : i32, i32
  }
  func.func @transform_2(%arg0: i32) -> (i32, i32) {
    %c0_i32 = arith.constant 0 : i32
    %c0_i32_0 = arith.constant 0 : i32
    %c0_i32_1 = arith.constant 0 : i32
    return %c0_i32, %c0_i32_0 : i32, i32
  }
  func.func @transform_3(%arg0: i32) -> (i32, i32) {
    %c0_i32 = arith.constant 0 : i32
    %c0_i32_0 = arith.constant 0 : i32
    %c0_i32_1 = arith.constant 0 : i32
    return %c0_i32, %c0_i32_0 : i32, i32
  }
  func.func @transform_4(%arg0: i32) -> (i32, i32) {
    %c0_i32 = arith.constant 0 : i32
    %c0_i32_0 = arith.constant 0 : i32
    %c0_i32_1 = arith.constant 0 : i32
    return %c0_i32, %c0_i32_0 : i32, i32
  }
  func.func @transform_5(%arg0: i32) -> (i32, i32) {
    %c0_i32 = arith.constant 0 : i32
    %c0_i32_0 = arith.constant 0 : i32
    %c0_i32_1 = arith.constant 0 : i32
    return %c0_i32, %c0_i32_0 : i32, i32
  }
  func.func @transform_6(%arg0: i32) -> (i32, i32) {
    %c0_i32 = arith.constant 0 : i32
    %c0_i32_0 = arith.constant 0 : i32
    return %arg0, %c0_i32 : i32, i32
  }
}

</mosaic_0001>

<bundles_post_ra>
// kernel: tpu_custom_call.1
= control target key start
LH: loop header
LB: loop body
LE: loop exit
PB: predicated region body
PF: predicated region fallthrough
CT: control target
= control target key end

     0   :  { %11 = vsyncpa [#allocation3], 0  ;;  %s1337_s0 = inlined_call_operand.hbm [shape: bf16[8,640], index: 0, kind: input, shape index: {}]   ;;  %s1338_s1 = inlined_call_operand.hbm [shape: bf16[640,128], index: 1, kind: input, shape index: {}]   ;;  %s1339_s2 = inlined_call_operand.vmem [shape: f32[1,128], index: 2, kind: input, shape index: {}]   ;;  %s1340_s3 = inlined_call_operand.hbm [shape: bf16[128,128], index: 3, kind: input, shape index: {}]   ;;  %s1341_s4 = inlined_call_operand.vmem [shape: f32[1,128], index: 4, kind: input, shape index: {}]   ;;  %s1342_s5 = inlined_call_operand.hbm [shape: bf16[128,128], index: 5, kind: input, shape index: {}]   ;;  %s1343_s6 = inlined_call_operand.hbm [shape: f32[8,128], index: 6, kind: output, shape index: {}]  }
   0x1   :  { %12 = vsyncpa [#allocation6], 0 }
   0x2   :  { %13 = vsyncpa [#allocation9], 0 }
   0x3   :  { %14 = vsyncpa [#allocation4], 0  ;;  %s1188_s21 = smov [#allocation5]   ;;  %s1070_s25 = scalar_lea.hbm %s1338_s1, 5120 }
   0x4   :  { %s30_s22 = sshll.u32 %s1188_s21, 4  ;;  %p1071_p0 = scmp.ne.s32.totalorder %s1338_s1, %s1070_s25  ;;  %s31_s22 = int_to_ptr.vmem [resolvable:$true] %s30_s22 }
   0x5   :  { %p1074_p1 = scmp.lt.u32.totalorder %s1070_s25, %s1338_s1 }
   0x7   :  { %p1076_p2 = pnand %p1074_p1, %p1071_p0 }
   0x9   :  { %1079 = shalt.err (!%p1076_p2)
}
   0xa   :  { %s1080_s30 = scalar_lea.vmem %s31_s22, 5120  ;;  %p1085_p4 = scmp.lt.s32.totalorder %s31_s22, %s31_s22 }
   0xb   :  { %p1081_p3 = scmp.ne.s32.totalorder %s31_s22, %s1080_s30  ;;  %p1086_p5 = scmp.lt.s32.totalorder %s1080_s30, %s1080_s30 }
   0xd   :  { %p1087_p6 = por %p1086_p5, %p1085_p4 }
   0xf   :  { %p1088_p7 = pnand %p1087_p6, %p1081_p3 }
  0x11   :  { %1091 = shalt.err (!%p1088_p7)
}
  0x12   :  { %s1189_s7 = smov 64   ;;  %s1190_s8 = smov 4  }
  0x13   :  { %36 = dma.hbm_to_vmem [thread:$0]  %s1338_s1, 5120, %s31_s22, [#allocation6], %s1189_s7, %s1189_s7, %s1190_s8  }
  0x14   :  { %s1191_s11 = smov [#allocation2]   ;;  %s1192_s13 = smov [#allocation7]  }
  0x15   :  { %s21_s12 = sshll.u32 %s1191_s11, 4  ;;  %s44_s14 = sshll.u32 %s1192_s13, 4  ;;  %s22_s12 = int_to_ptr.vmem [resolvable:$true] %s21_s12  ;;  %s45_s14 = int_to_ptr.vmem [resolvable:$true] %s44_s14 }
  0x16   :  { %s1092_s17 = scalar_lea.hbm %s1337_s0, 320 }
  0x17   :  { %p1093_p8 = scmp.ne.s32.totalorder %s1337_s0, %s1092_s17  ;;  %p1096_p9 = scmp.lt.u32.totalorder %s1092_s17, %s1337_s0 }
  0x19   :  { %p1098_p10 = pnand %p1096_p9, %p1093_p8 }
  0x1b   :  { %1101 = shalt.err (!%p1098_p10)
}
  0x1c   :  { %s1102_s1 = scalar_lea.vmem %s22_s12, 320  ;;  %p1107_p12 = scmp.lt.s32.totalorder %s22_s12, %s22_s12 }
  0x1d   :  { %p1103_p11 = scmp.ne.s32.totalorder %s22_s12, %s1102_s1  ;;  %p1108_p13 = scmp.lt.s32.totalorder %s1102_s1, %s1102_s1 }
  0x1f   :  { %p1109_p0 = por %p1108_p13, %p1107_p12 }
  0x21   :  { %p1110_p1 = pnand %p1109_p0, %p1103_p11 }
  0x23   :  { %1113 = shalt.err (!%p1110_p1)
}
  0x24   :  { %24 = dma.hbm_to_vmem [thread:$0]  %s1337_s0, 320, %s22_s12, [#allocation3]  }
  0x25   :  { %s1114_s26 = scalar_lea.hbm %s1340_s3, 1024 }
  0x26   :  { %p1115_p2 = scmp.ne.s32.totalorder %s1340_s3, %s1114_s26  ;;  %p1118_p3 = scmp.lt.u32.totalorder %s1114_s26, %s1340_s3 }
  0x28   :  { %p1120_p4 = pnand %p1118_p3, %p1115_p2 }
  0x2a   :  { %1123 = shalt.err (!%p1120_p4)
}
  0x2b   :  { %s1124_s9 = scalar_lea.vmem %s45_s14, 1024  ;;  %p1129_p6 = scmp.lt.s32.totalorder %s45_s14, %s45_s14 }
  0x2c   :  { %p1125_p5 = scmp.ne.s32.totalorder %s45_s14, %s1124_s9  ;;  %p1130_p7 = scmp.lt.s32.totalorder %s1124_s9, %s1124_s9 }
  0x2e   :  { %p1131_p8 = por %p1130_p7, %p1129_p6 }
  0x30   :  { %p1132_p9 = pnand %p1131_p8, %p1125_p5 }
  0x32   :  { %1135 = shalt.err (!%p1132_p9)
}
  0x33   :  { %50 = dma.hbm_to_vmem [thread:$0]  %s1340_s3, 1024, %s45_s14, [#allocation6], %s1189_s7, %s1189_s7, %s1190_s8  }
  0x34   :  { %s1193_s11 = smov [#allocation8]   ;;  %s1136_s16 = scalar_lea.hbm %s1342_s5, 1024 }
  0x35   :  { %s58_s12 = sshll.u32 %s1193_s11, 4  ;;  %p1137_p10 = scmp.ne.s32.totalorder %s1342_s5, %s1136_s16  ;;  %s59_s12 = int_to_ptr.vmem [resolvable:$true] %s58_s12 }
  0x36   :  { %p1140_p11 = scmp.lt.u32.totalorder %s1136_s16, %s1342_s5 }
  0x38   :  { %p1142_p12 = pnand %p1140_p11, %p1137_p10 }
  0x3a   :  { %1145 = shalt.err (!%p1142_p12)
}
  0x3b   :  { %s1146_s21 = scalar_lea.vmem %s59_s12, 1024  ;;  %p1151_p0 = scmp.lt.s32.totalorder %s59_s12, %s59_s12 }
  0x3c   :  { %p1147_p13 = scmp.ne.s32.totalorder %s59_s12, %s1146_s21  ;;  %p1152_p1 = scmp.lt.s32.totalorder %s1146_s21, %s1146_s21 }
  0x3e   :  { %p1153_p2 = por %p1152_p1, %p1151_p0 }
  0x40   :  { %p1154_p3 = pnand %p1153_p2, %p1147_p13 }
  0x42   :  { %1157 = shalt.err (!%p1154_p3)
}
  0x43   :  { %64 = dma.hbm_to_vmem [thread:$0]  %s1342_s5, 1024, %s59_s12, [#allocation9], %s1189_s7, %s1189_s7, %s1190_s8  }
  0x44   :  { %1180 = dma.done.wait [#allocation3], 320  }
  0x45   :  { %1181 = vsyncadd [#allocation3], 4294966976 }
  0x46   :  { %1182 = dma.done.wait [#allocation6], 6144  }
  0x47   :  { %1183 = vsyncadd [#allocation6], 4294961152 }
  0x48   :  { %1184 = dma.done.wait [#allocation9], 1024  }
  0x49   :  { %1185 = vsyncadd [#allocation9], 4294966272  ;;  %v1003_v0 = vld [vmem:[#allocation5 + $0x40] sm:$0xff]   ;;  %v1007_v4 = vld [vmem:[#allocation5 + $0x48] sm:$0xff]   ;;  %v1194_v35 = vmov 0.0   ;;  %vm1195_vm0 = vmmov 0  }
  0x4a   :  { %v1004_v1 = vld [vmem:[#allocation5] sm:$0xff]   ;;  %863 = vmatprep.subr.bf16.mxu0 %v1003_v0  ;;  %v1008_v5 = vld [vmem:[#allocation5 + $0x8] sm:$0xff]   ;;  %v1011_v8 = vld [vmem:[#allocation5 + $0x50] sm:$0xff]  }
  0x4b   :  { %v1005_v2 = vld [vmem:[#allocation5 + $0xc0] sm:$0xff]   ;;  %864 = vmatpush3.bf16.msra.mxu0 %v1004_v1  ;;  %v1009_v6 = vld [vmem:[#allocation5 + $0xc8] sm:$0xff]   ;;  %v1012_v9 = vld [vmem:[#allocation5 + $0x10] sm:$0xff]  }
  0x4c   :  { %v1006_v3 = vld [vmem:[#allocation5 + $0x80] sm:$0xff]   ;;  %885 = vmatprep.subr.bf16.mxu1 %v1005_v2  ;;  %865 = vmatprep.subr.bf16.mxu0 %v1007_v4  ;;  %v1010_v7 = vld [vmem:[#allocation5 + $0x88] sm:$0xff]   ;;  %v1013_v10 = vld [vmem:[#allocation5 + $0xd0] sm:$0xff]  }
  0x4d   :  { %886 = vmatpush3.bf16.msra.mxu1 %v1006_v3  ;;  %v1014_v11 = vld [vmem:[#allocation5 + $0x90] sm:$0xff]   ;;  %v1015_v12 = vld [vmem:[#allocation5 + $0x58] sm:$0xff]   ;;  %v1019_v16 = vld [vmem:[#allocation5 + $0x60] sm:$0xff]  }
  0x4e   :  { %887 = vmatprep.subr.bf16.mxu1 %v1009_v6  ;;  %v1016_v13 = vld [vmem:[#allocation5 + $0x18] sm:$0xff]   ;;  %v1020_v17 = vld [vmem:[#allocation5 + $0x20] sm:$0xff]   ;;  %v1023_v20 = vld [vmem:[#allocation5 + $0x68] sm:$0xff]  }
  0x4f   :  { %866 = vmatpush3.bf16.msra.mxu0 %v1008_v5  ;;  %v1017_v14 = vld [vmem:[#allocation5 + $0xd8] sm:$0xff]   ;;  %v1021_v18 = vld [vmem:[#allocation5 + $0xe0] sm:$0xff]   ;;  %v1024_v21 = vld [vmem:[#allocation5 + $0x28] sm:$0xff]  }
  0x50   :  { %867 = vmatprep.subr.bf16.mxu0 %v1011_v8  ;;  %v1018_v15 = vld [vmem:[#allocation5 + $0x98] sm:$0xff]   ;;  %v1022_v19 = vld [vmem:[#allocation5 + $0xa0] sm:$0xff]   ;;  %v1025_v22 = vld [vmem:[#allocation5 + $0xe8] sm:$0xff]  }
  0x51   :  { %888 = vmatpush3.bf16.msra.mxu1 %v1010_v7  ;;  %v1026_v23 = vld [vmem:[#allocation5 + $0xa8] sm:$0xff]   ;;  %v1027_v24 = vld [vmem:[#allocation5 + $0x70] sm:$0xff]   ;;  %v1031_v28 = vld [vmem:[#allocation5 + $0x78] sm:$0xff]  }
  0x52   :  { %889 = vmatprep.subr.bf16.mxu1 %v1013_v10  ;;  %v1028_v25 = vld [vmem:[#allocation5 + $0x30] sm:$0xff]   ;;  %v1032_v29 = vld [vmem:[#allocation5 + $0x38] sm:$0xff]   ;;  %v1039_v39 = vld [vmem:[#allocation5 + $0x100] sm:$0xff]  }
  0x53   :  { %868 = vmatpush3.bf16.msra.mxu0 %v1012_v9  ;;  %v1029_v26 = vld [vmem:[#allocation5 + $0xf0] sm:$0xff]   ;;  %v1033_v30 = vld [vmem:[#allocation5 + $0xf8] sm:$0xff]   ;;  %v1040_v40 = vld [vmem:[#allocation5 + $0x108] sm:$0xff]  }
  0x54   :  { %869 = vmatprep.subr.bf16.mxu0 %v1015_v12  ;;  %v1030_v27 = vld [vmem:[#allocation5 + $0xb0] sm:$0xff]   ;;  %v1036_v34 = vld [vmem:[#allocation5 + $0xb8] sm:$0xff]   ;;  %v1043_v43 = vld [vmem:[#allocation5 + $0x120] sm:$0xff]  }
  0x55   :  { %890 = vmatpush3.bf16.msra.mxu1 %v1014_v11  ;;  %v78_v31 = vld [vmem:[#allocation2] sm:$0xff]  ;;  %v79_v36 = vld [vmem:[#allocation2 + $0x8] sm:$0xff]  ;;  %v1047_v47 = vld [vmem:[#allocation2 + $0x10] ss:$0 sps:$4 sm:$0xff]  }
  0x56   :  { %891 = vmatprep.subr.bf16.mxu1 %v1017_v14  ;;  %v801_v32 = vcombine.low %v78_v31, %v78_v31  ;;  %v802_v33 = vcombine.high %v78_v31, %v78_v31  ;;  %v803_v37 = vcombine.low %v79_v36, %v79_v36  ;;  %v804_v38 = vcombine.high %v79_v36, %v79_v36  ;;  %v1041_v41 = vld [vmem:[#allocation5 + $0x110] sm:$0xff]   ;;  %v1042_v42 = vld [vmem:[#allocation5 + $0x118] sm:$0xff]   ;;  %v1044_v44 = vld [vmem:[#allocation5 + $0x128] sm:$0xff]  }
  0x57   :  { %870 = vmatpush3.bf16.msra.mxu0 %v1016_v13  ;;  %v1045_v45 = vld [vmem:[#allocation5 + $0x130] sm:$0xff]   ;;  %v1046_v46 = vld [vmem:[#allocation5 + $0x138] sm:$0xff]   ;;  %v1048_v48 = vld [vmem:[#allocation7] sm:$0xff]  }
  0x58   :  { %871 = vmatprep.subr.bf16.mxu0 %v1019_v16  ;;  %458 = vmatprep.mubr.bf16.mxu0 %v802_v33  ;;  %v1049_v49 = vld [vmem:[#allocation7 + $0x8] sm:$0xff]   ;;  %v1050_v50 = vld [vmem:[#allocation7 + $0x10] sm:$0xff]   ;;  %v1051_v51 = vld [vmem:[#allocation7 + $0x18] sm:$0xff]  }
  0x59   :  { %892 = vmatpush3.bf16.msra.mxu1 %v1018_v15  ;;  %498 = vmatprep.mubr.bf16.mxu1 %v804_v38  ;;  %v1052_v52 = vld [vmem:[#allocation7 + $0x20] sm:$0xff]   ;;  %v1053_v53 = vld [vmem:[#allocation7 + $0x28] sm:$0xff]   ;;  %v1054_v54 = vld [vmem:[#allocation7 + $0x30] sm:$0xff]  }
  0x5a   :  { %893 = vmatprep.subr.bf16.mxu1 %v1021_v18  ;;  %v1055_v55 = vld [vmem:[#allocation7 + $0x38] sm:$0xff]   ;;  %v1056_v56 = vld [vmem:[#allocation8] sm:$0xff]   ;;  %v1057_v57 = vld [vmem:[#allocation8 + $0x8] sm:$0xff]  }
  0x5b   :  { %872 = vmatpush3.bf16.msra.mxu0 %v1020_v17  ;;  %v1058_v58 = vld [vmem:[#allocation8 + $0x10] sm:$0xff]   ;;  %v1059_v59 = vld [vmem:[#allocation8 + $0x18] sm:$0xff]   ;;  %v1060_v60 = vld [vmem:[#allocation8 + $0x20] sm:$0xff]  }
  0x5c   :  { %873 = vmatprep.subr.bf16.mxu0 %v1023_v20  ;;  %v1061_v61 = vld [vmem:[#allocation8 + $0x28] sm:$0xff]   ;;  %v1062_v62 = vld [vmem:[#allocation8 + $0x30] sm:$0xff]  }
  0x5d   :  { %894 = vmatpush3.bf16.msra.mxu1 %v1022_v19  ;;  %v800_v0 = vld [vmem:[%s1339_s2] ss:$0 sm:$0xff]  ;;  %v1063_v19 = vld [vmem:[#allocation8 + $0x38] sm:$0xff]  }
  0x5e   :  { %895 = vmatprep.subr.bf16.mxu1 %v1025_v22  ;;  %v846_v20 = vld [vmem:[%s1341_s4] ss:$0 sm:$0xff]  ;;  %s1196_s4 = smov [#allocation10]  }
  0x5f   :  { %874 = vmatpush3.bf16.msra.mxu0 %v1024_v21  ;;  %s789_s1 = sshll.u32 %s1196_s4, 4  ;;  %s790_s1 = int_to_ptr.vmem [resolvable:$true] %s789_s1 }
  0x60   :  { %875 = vmatprep.subr.bf16.mxu0 %v1027_v24  ;;  %s1158_s22 = scalar_lea.vmem %s790_s1, 128  ;;  %p1163_p5 = scmp.lt.s32.totalorder %s790_s1, %s790_s1 }
  0x61   :  { %896 = vmatpush3.bf16.msra.mxu1 %v1026_v23  ;;  %p1159_p4 = scmp.ne.s32.totalorder %s790_s1, %s1158_s22  ;;  %p1164_p6 = scmp.lt.s32.totalorder %s1158_s22, %s1158_s22 }
  0x62   :  { %897 = vmatprep.subr.bf16.mxu1 %v1029_v26 }
  0x63   :  { %876 = vmatpush3.bf16.msra.mxu0 %v1028_v25  ;;  %p1165_p7 = por %p1164_p6, %p1163_p5 }
  0x64   :  { %877 = vmatprep.subr.bf16.mxu0 %v1031_v28 }
  0x65   :  { %898 = vmatpush3.bf16.msra.mxu1 %v1030_v27  ;;  %p1166_p8 = pnand %p1165_p7, %p1159_p4 }
  0x66   :  { %899 = vmatprep.subr.bf16.mxu1 %v1033_v30 }
  0x67   :  { %878 = vmatpush3.bf16.msra.mxu0 %v1032_v29 }
  0x68   :  { %934 = vmatprep.subr.bf16.mxu0 %v1194_v35 }
  0x69   :  { %900 = vmatpush3.bf16.msra.mxu1 %v1036_v34 }
  0x6a   :  { %459 = vmatmul.mubr.bf16.vlgmr.msra.gmra.mrb[0].mxu0 %v801_v32  ;;  %954 = vmatprep.subr.bf16.mxu1 %v1194_v35 }
  0x6b   :  { %935 = vmatpush3.bf16.msra.mxu0 %v1039_v39  ;;  %950 = vmatprep.mubr.msk.bf16.mxu0 %vm1195_vm0, %v1194_v35 }
  0x6c   :  { %499 = vmatmul.mubr.bf16.vlgmr.msra.gmra.mrb[0].mxu1 %v803_v37  ;;  %936 = vmatprep.subr.bf16.mxu0 %v1194_v35 }
  0x6d   :  { %970 = vmatprep.mubr.msk.bf16.mxu1 %vm1195_vm0, %v1194_v35  ;;  %955 = vmatpush3.bf16.msra.mxu1 %v1048_v48 }
  0x6e   :  { %956 = vmatprep.subr.bf16.mxu1 %v1194_v35 }
  0x6f   :  { %937 = vmatpush3.bf16.msra.mxu0 %v1040_v40 }
  0x70   :  { %938 = vmatprep.subr.bf16.mxu0 %v1194_v35 }
  0x71   :  { %957 = vmatpush3.bf16.msra.mxu1 %v1049_v49 }
  0x72   :  { %958 = vmatprep.subr.bf16.mxu1 %v1194_v35 }
  0x73   :  { %939 = vmatpush3.bf16.msra.mxu0 %v1041_v41 }
  0x74   :  { %940 = vmatprep.subr.bf16.mxu0 %v1194_v35 }
  0x75   :  { %959 = vmatpush3.bf16.msra.mxu1 %v1050_v50 }
  0x76   :  { %960 = vmatprep.subr.bf16.mxu1 %v1194_v35 }
  0x77   :  { %941 = vmatpush3.bf16.msra.mxu0 %v1042_v42 }
  0x78   :  { %942 = vmatprep.subr.bf16.mxu0 %v1194_v35 }
  0x79   :  { %961 = vmatpush3.bf16.msra.mxu1 %v1051_v51 }
  0x7a   :  { %962 = vmatprep.subr.bf16.mxu1 %v1194_v35 }
  0x7b   :  { %943 = vmatpush3.bf16.msra.mxu0 %v1043_v43 }
  0x7c   :  { %944 = vmatprep.subr.bf16.mxu0 %v1194_v35 }
  0x7d   :  { %963 = vmatpush3.bf16.msra.mxu1 %v1052_v52 }
  0x7e   :  { %964 = vmatprep.subr.bf16.mxu1 %v1194_v35 }
  0x7f   :  { %945 = vmatpush3.bf16.msra.mxu0 %v1044_v44 }
  0x80   :  { %946 = vmatprep.subr.bf16.mxu0 %v1194_v35 }
  0x81   :  { %965 = vmatpush3.bf16.msra.mxu1 %v1053_v53 }
  0x82   :  { %966 = vmatprep.subr.bf16.mxu1 %v1194_v35 }
  0x83   :  { %947 = vmatpush3.bf16.msra.mxu0 %v1045_v45 }
  0x84   :  { %948 = vmatprep.subr.bf16.mxu0 %v1194_v35 }
  0x85   :  { %967 = vmatpush3.bf16.msra.mxu1 %v1054_v54 }
  0x86   :  { %968 = vmatprep.subr.bf16.mxu1 %v1194_v35 }
  0x87   :  { %949 = vmatpush3.bf16.msra.mxu0 %v1046_v46 }
  0x88   :  { %974 = vmatprep.subr.bf16.mxu0 %v1194_v35 }
  0x89   :  { %969 = vmatpush3.bf16.msra.mxu1 %v1055_v55 }
  0x8a   :  { %951 = vmatmul.mubr.bf16.vlgmr.msra.gmra.mrb[4].mxu0 %v1047_v47 }
  0x8b   :  { %990 = vmatprep.mubr.msk.bf16.mxu0 %vm1195_vm0, %v1194_v35  ;;  %975 = vmatpush3.bf16.msra.mxu0 %v1056_v56 }
  0x8c   :  { %976 = vmatprep.subr.bf16.mxu0 %v1194_v35 }
  0x8f   :  { %977 = vmatpush3.bf16.msra.mxu0 %v1057_v57 }
  0x90   :  { %978 = vmatprep.subr.bf16.mxu0 %v1194_v35 }
  0x93   :  { %979 = vmatpush3.bf16.msra.mxu0 %v1058_v58 }
  0x94   :  { %980 = vmatprep.subr.bf16.mxu0 %v1194_v35 }
  0x97   :  { %981 = vmatpush3.bf16.msra.mxu0 %v1059_v59 }
  0x98   :  { %982 = vmatprep.subr.bf16.mxu0 %v1194_v35 }
  0x9b   :  { %983 = vmatpush3.bf16.msra.mxu0 %v1060_v60 }
  0x9c   :  { %984 = vmatprep.subr.bf16.mxu0 %v1194_v35 }
  0x9f   :  { %985 = vmatpush3.bf16.msra.mxu0 %v1061_v61 }
  0xa0   :  { %986 = vmatprep.subr.bf16.mxu0 %v1194_v35 }
  0xa3   :  { %987 = vmatpush3.bf16.msra.mxu0 %v1062_v62 }
  0xa4   :  { %988 = vmatprep.subr.bf16.mxu0 %v1194_v35 }
  0xa7   :  { %989 = vmatpush3.bf16.msra.mxu0 %v1063_v19 }
 0x13d   :  { %v879_v63 = vpop.f32.mrb[0].mxu0 }
 0x13e   :  { %v880_v1 = vpop.f32.mrb[1].mxu0 }
 0x13f   :  { %v881_v2 = vadd.f32 %v880_v1, %v879_v63  ;;  %v882_v3 = vpop.f32.mrb[2].mxu0  ;;  %v901_v4 = vpop.f32.mrb[0].mxu1 }
 0x140   :  { %v883_v5 = vpop.f32.mrb[3].mxu0  ;;  %v902_v6 = vpop.f32.mrb[1].mxu1 }
 0x141   :  { %v461_v7 = vadd.f32 %v881_v2, %v800_v0  ;;  %v903_v8 = vadd.f32 %v902_v6, %v901_v4  ;;  %v904_v9 = vpop.f32.mrb[2].mxu1 }
 0x142   :  { %v905_v10 = vpop.f32.mrb[3].mxu1 }
 0x143   :  { %v501_v11 = vadd.f32 %v903_v8, %v461_v7 }
 0x15d   :  { %v540_v12 = vpop.f32.mrb[4].mxu0 }
 0x15e   :  { %v541_v13 = vadd.f32 %v540_v12, %v501_v11  ;;  %v952_v14 = vpop.f32.mrb[5].mxu0 }
 0x15f   :  { %v543_v15 = vpop.f32.mrb[6].mxu0 }
 0x160   :  { %1064 = vtanh.f32 %v541_v13  ;;  %v953_v16 = vpop.f32.mrb[7].mxu0 }
 0x16a   :  { %v1065_v17 = vpop.eup %1064 }
 0x16b   :  { %v547_v18 = vpack.c.bf16 %v1065_v17, %v1065_v17 }
 0x16d   :  { %971 = vmatmul.mubr.bf16.vlgmr.msra.gmra.mrb[4].mxu1 %v547_v18 }
 0x240   :  { %v653_v21 = vpop.f32.mrb[4].mxu1 }
 0x241   :  { %v654_v22 = vadd.f32 %v846_v20, %v653_v21  ;;  %v972_v23 = vpop.f32.mrb[5].mxu1 }
 0x242   :  { %v656_v24 = vpop.f32.mrb[6].mxu1 }
 0x243   :  { %v659_v25 = vpack.c.bf16 %v654_v22, %v654_v22  ;;  %v973_v26 = vpop.f32.mrb[7].mxu1 }
 0x245   :  { %991 = vmatmul.mubr.bf16.vlgmr.msra.gmra.mrb[8].mxu0 %v659_v25 }
 0x318   :  { %v758_v27 = vpop.f32.mrb[8].mxu0 }
 0x319   :  { %v767_v28 = vand.u32 2147483647, %v758_v27  ;;  %v992_v29 = vpop.f32.mrb[9].mxu0  ;;  %v764_v42 = vmax.f32 %v758_v27, 0.0  ;;  %vm765_vm2 = vcmp.ne.f32.partialorder %v758_v27, %v758_v27 }
 0x31a   :  { %v761_v30 = vpop.f32.mrb[10].mxu0 }
 0x31b   :  { %v768_v31 = vsub.f32 0.0, %v767_v28  ;;  %v993_v32 = vpop.f32.mrb[11].mxu0 }
 0x31d   :  { %v769_v33 = vmul.f32 1.442695, %v768_v31 }
 0x31f   :  { %1066 = vpow2.f32 %v769_v33 }
 0x329   :  { %v1067_v34 = vpop.eup %1066 }
 0x32a   :  { %v771_v35 = vadd.f32 1.0, %v1067_v34  ;;  %v774_v36 = vmul.f32 -0.5, %v1067_v34  ;;  %v777_v38 = vand.u32 2147483647, %v1067_v34 }
 0x32c   :  { %1068 = vlog2.f32 %v771_v35  ;;  %v775_v37 = vadd.f32 1.0, %v774_v36  ;;  %vm778_vm1 = vcmp.lt.f32.partialorder %v777_v38, 0.0004427343 }
 0x32e   :  { %v776_v41 = vmul.f32 %v1067_v34, %v775_v37 }
 0x336   :  { %v1069_v39 = vpop.eup %1068 }
 0x337   :  { %v773_v40 = vmul.f32 0.6931472, %v1069_v39 }
 0x339   :  { %v779_v43 = vsel %vm778_vm1, %v776_v41, %v773_v40 }
 0x33a   :  { %v780_v44 = vadd.f32 %v779_v43, %v764_v42 }
 0x33c   :  { %v781_v45 = vsel %vm765_vm2, %v758_v27, %v780_v44 }
 0x33d   :  { %782 = vst [vmem:[#allocation10] sm:$0xff] %v781_v45 }
 0x33e   :  { %1169 = shalt.err (!%p1166_p8)
}
 0x33f   :  { %s1170_s25 = scalar_lea.hbm %s1343_s6, 128 }
 0x340   :  { %p1171_p9 = scmp.ne.s32.totalorder %s1343_s6, %s1170_s25  ;;  %p1174_p10 = scmp.lt.u32.totalorder %s1170_s25, %s1343_s6 }
 0x342   :  { %p1176_p11 = pnand %p1174_p10, %p1171_p9 }
 0x344   :  { %1179 = shalt.err (!%p1176_p11)
}
 0x345   :  { %792 = dma.vmem_to_hbm [thread:$0]  %s790_s1, 128, %s1343_s6, [#allocation4]  }
 0x346   :  { %1186 = dma.done.wait [#allocation4], 128  }
 0x347   :  { %1187 = vsyncadd [#allocation4], 4294967168 }
 0x348   :  { %796 = vsyncpa [#allocation3], 1 }
 0x349   :  { %797 = vsyncpa [#allocation6], 1 }
 0x34a   :  { %798 = vsyncpa [#allocation9], 1 }
 0x34b   :  { %799 = vsyncpa [#allocation4], 1 }

</bundles_post_ra>
